<compile_context>
chip_gen: v6e
topology: v6e:2x2x1
jax: 0.10.0
libtpu: 0.0.40
codegen_flags: <defaults>
</compile_context>

<pallas_src>
import functools

import jax
import jax.numpy as jnp
from jax.experimental import pallas as pl
from jax.experimental.pallas import tpu as pltpu

CLIP_FEATURE_DIM = 512   # CLIP feature dim (module default n_features)
HIDDEN = 512
N_CLASSES = 18
C_PAD = 128              # lane-dense padded class dim (multiple of 128)
TILE_B_MAX = 1024        # batch tile; amortizes per-step pipeline overhead


def _round_up(x, m):
    return ((x + m - 1) // m) * m


def _mlp_kernel(*refs, normalize: bool):
    """Fused fc1 -> ReLU -> fc2 on one (tile_b, ...) batch tile.

    Refs (in order): x [, fmin, inv_range], w1, b1, w2, b2, out.
    x arrives f32 and is cast to bf16 in-kernel; MXU accumulates in f32.
    """
    if normalize:
        x_ref, fmin_ref, inv_ref, w1_ref, b1_ref, w2_ref, b2_ref, o_ref = refs
        x = ((x_ref[...] - fmin_ref[...]) * inv_ref[...]).astype(jnp.bfloat16)
    else:
        x_ref, w1_ref, b1_ref, w2_ref, b2_ref, o_ref = refs
        x = x_ref[...].astype(jnp.bfloat16)

    # fc1 on the MXU (bf16 operands, f32 accumulation); bias + ReLU on f32 (VPU).
    h = jnp.dot(x, w1_ref[...], preferred_element_type=jnp.float32)
    h = jnp.maximum(h + b1_ref[...], 0.0)
    # fc2: cast activations back to bf16 for MXU throughput, keep f32 accumulation.
    logits = jnp.dot(h.astype(jnp.bfloat16), w2_ref[...],
                     preferred_element_type=jnp.float32)
    o_ref[...] = (logits + b2_ref[...]).astype(o_ref.dtype)


def prepare_params(w1_t, b1, w2_t, b2):
    """One-time (model-load) preprocessing. Do NOT call per forward.

    Pads the class dim to a lane-dense multiple of 128 (unmasked output stores)
    and casts weights to bf16; biases stay f32 (added on the f32 accumulator).
    PyTorch stores W as (out, in); inputs here are already transposed (in, out).
    """
    H, C = w2_t.shape
    c_pad = max(C_PAD, _round_up(C, 128))
    w2_p = jnp.zeros((H, c_pad), jnp.float32).at[:, :C].set(w2_t)
    b2_p = jnp.zeros((1, c_pad), jnp.float32).at[:, :C].set(b2.reshape(1, -1))
    return (w1_t.astype(jnp.bfloat16),
            b1.reshape(1, -1).astype(jnp.float32),
            w2_p.astype(jnp.bfloat16),
            b2_p.astype(jnp.float32))


@functools.partial(jax.jit,
                   static_argnames=("n_classes", "normalize", "out_dtype"))
def mlp_forward(x, w1_bf, b1, w2_bf, b2, features_min=None, inv_range=None,
                *, n_classes=N_CLASSES, normalize=False, out_dtype=jnp.float32):
    """x: (B, F) f32; w1_bf: (F, H) bf16; b1: (1, H) f32;
    w2_bf: (H, c_pad) bf16; b2: (1, c_pad) f32 (from prepare_params).

    Returns (B, n_classes) logits (same semantics as MultiClassClassifier.forward).
    """
    B, F = x.shape
    H = w1_bf.shape[1]
    c_pad = w2_bf.shape[1]

    # Batch tile: multiple of 16 (native bf16/sublane tiling), capped at 1024.
    tile_b = min(TILE_B_MAX, _round_up(B, 16))
    # v7x megacore: keep >= 2 grid steps when there is enough work so the
    # "parallel" axis actually feeds both TensorCores (harmless on v5e/v6e).
    if B > 256 and pl.cdiv(B, tile_b) == 1:
        tile_b = _round_up(pl.cdiv(B, 2), 16)
    grid = (pl.cdiv(B, tile_b),)   # ragged last block is masked by Pallas

    resident = lambda shape: pl.BlockSpec(shape, lambda i: (0, 0))

    in_specs = [pl.BlockSpec((tile_b, F), lambda i: (i, 0))]   # x: pipelined
    args = [x]
    if normalize:
        in_specs += [resident((1, F)), resident((1, F))]
        args += [features_min.reshape(1, F).astype(jnp.float32),
                 (inv_range.reshape(1, F).astype(jnp.float32))]
    in_specs += [
        resident((F, H)),        # W1: DMA'd once, resident across steps
        resident((1, H)),        # b1
        resident((H, c_pad)),    # W2 (padded)
        resident((1, c_pad)),    # b2 (padded)
    ]
    args += [w1_bf, b1, w2_bf, b2]

    out_bytes = jnp.dtype(out_dtype).itemsize
    cost = pl.CostEstimate(
        flops=2 * B * F * H + 2 * B * H * c_pad,
        transcendentals=0,
        bytes_accessed=(x.size * 4 + w1_bf.size * 2 + w2_bf.size * 2
                        + b1.size * 4 + b2.size * 4 + B * c_pad * out_bytes),
    )

    out = pl.pallas_call(
        functools.partial(_mlp_kernel, normalize=normalize),
        out_shape=jax.ShapeDtypeStruct((B, c_pad), out_dtype),
        grid=grid,
        in_specs=in_specs,
        out_specs=pl.BlockSpec((tile_b, c_pad), lambda i: (i, 0)),
        compiler_params=pltpu.CompilerParams(
            dimension_semantics=("parallel",),
            vmem_limit_bytes=32 * 1024 * 1024,   # covers v5e's 16 MiB default
        ),
        cost_estimate=cost,
    )(*args)

    # Slice class-dim padding off before any downstream softmax / argmax.
    return out[:, :n_classes]


def init_params(key, n_features=CLIP_FEATURE_DIM, hidden=HIDDEN, n_classes=N_CLASSES):
    """Deterministic init mimicking nn.Linear defaults (uniform +/- 1/sqrt(fan_in)).
    Weights are stored pre-transposed to (in, out) for the kernel."""
    k1, k2, k3, k4 = jax.random.split(key, 4)
    bound1 = 1.0 / jnp.sqrt(n_features)
    bound2 = 1.0 / jnp.sqrt(hidden)
    w1_t = jax.random.uniform(k1, (n_features, hidden), jnp.float32, -bound1, bound1)
    b1 = jax.random.uniform(k2, (1, hidden), jnp.float32, -bound1, bound1)
    w2_t = jax.random.uniform(k3, (hidden, n_classes), jnp.float32, -bound2, bound2)
    b2 = jax.random.uniform(k4, (1, n_classes), jnp.float32, -bound2, bound2)
    return w1_t, b1, w2_t, b2


if __name__ == "__main__":
    key = jax.random.PRNGKey(0)
    kx, kp = jax.random.split(key)

    B = 8  # small inference batch
    x = jax.random.normal(kx, (B, CLIP_FEATURE_DIM), jnp.float32)
    w1_t, b1, w2_t, b2 = init_params(kp)

    # Model-load-time preprocessing (padding + bf16 cast) -- done once.
    params = prepare_params(w1_t, b1, w2_t, b2)

    # --- normalize=False path (module default) ---
    logits = mlp_forward(x, *params)
    jax.block_until_ready(logits)

    # Reference in plain JAX, using the same bf16-rounded operands the kernel sees.
    w1_32 = w1_t.astype(jnp.bfloat16).astype(jnp.float32)
    w2_32 = w2_t.astype(jnp.bfloat16).astype(jnp.float32)
    x32 = x.astype(jnp.bfloat16).astype(jnp.float32)
    h_ref = jnp.maximum(x32 @ w1_32 + b1, 0.0)
    ref = h_ref.astype(jnp.bfloat16).astype(jnp.float32) @ w2_32 + b2

    assert logits.shape == (B, N_CLASSES)
    assert logits.dtype == jnp.float32
    assert jnp.allclose(logits, ref, atol=2e-2, rtol=2e-2), (
        float(jnp.max(jnp.abs(logits - ref))))

    # --- normalize=True path (fused in-kernel min-max scaling) ---
    fmin = x.min(axis=0, keepdims=True)
    fmax = x.max(axis=0, keepdims=True)
    inv_range = 1.0 / (fmax - fmin)
    logits_n = mlp_forward(x, *params, features_min=fmin, inv_range=inv_range,
                           normalize=True)
    jax.block_until_ready(logits_n)

    xn = ((x - fmin) * inv_range).astype(jnp.bfloat16).astype(jnp.float32)
    h_ref_n = jnp.maximum(xn @ w1_32 + b1, 0.0)
    ref_n = h_ref_n.astype(jnp.bfloat16).astype(jnp.float32) @ w2_32 + b2
    assert jnp.allclose(logits_n, ref_n, atol=2e-2, rtol=2e-2), (
        float(jnp.max(jnp.abs(logits_n - ref_n))))

    print("KERNEL_OK")
</pallas_src>

<mosaic_0001>
module attributes {stable_mosaic.version = 11 : i64} {
  func.func @_mlp_kernel(%arg0: i32, %arg1: memref<16x512xf32, #tpu.memory_space<vmem>>, %arg2: memref<512x512xbf16, #tpu.memory_space<vmem>>, %arg3: memref<1x512xf32, #tpu.memory_space<vmem>>, %arg4: memref<512x128xbf16, #tpu.memory_space<vmem>>, %arg5: memref<1x128xf32, #tpu.memory_space<vmem>>, %arg6: memref<16x128xf32, #tpu.memory_space<vmem>>) attributes {dimension_semantics = [#tpu.dimension_semantics<parallel>], iteration_bounds = array<i64: 1>, scalar_prefetch = 0 : i64, scratch_operands = 0 : i64, tpu.core_type = #tpu.core_type<tc>, window_params = [{transform_indices = @transform_0, window_bounds = array<i64: 16, 512>}, {pipeline_mode = #tpu.pipeline_mode<synchronous>, transform_indices = @transform_1, window_bounds = array<i64: 512, 512>}, {pipeline_mode = #tpu.pipeline_mode<synchronous>, transform_indices = @transform_2, window_bounds = array<i64: 1, 512>}, {pipeline_mode = #tpu.pipeline_mode<synchronous>, transform_indices = @transform_3, window_bounds = array<i64: 512, 128>}, {pipeline_mode = #tpu.pipeline_mode<synchronous>, transform_indices = @transform_4, window_bounds = array<i64: 1, 128>}, {transform_indices = @transform_5, window_bounds = array<i64: 16, 128>}]} {
    %c0 = arith.constant 0 : index
    %c0_0 = arith.constant 0 : index
    %0 = vector.load %arg1[%c0, %c0_0] : memref<16x512xf32, #tpu.memory_space<vmem>>, vector<16x512xf32>
    %1 = arith.truncf %0 : vector<16x512xf32> to vector<16x512xbf16>
    %c0_1 = arith.constant 0 : index
    %c0_2 = arith.constant 0 : index
    %2 = vector.load %arg2[%c0_1, %c0_2] : memref<512x512xbf16, #tpu.memory_space<vmem>>, vector<512x512xbf16>
    %cst = arith.constant dense<0.000000e+00> : vector<16x512xf32>
    %3 = tpu.matmul %1, %2, %cst {dimension_numbers = #tpu.dot_dimension_numbers<[1], [0], [0], [1], [0, 0, 1, 1], [], []>} : vector<16x512xbf16>, vector<512x512xbf16>, vector<16x512xf32> -> vector<16x512xf32>
    %c0_3 = arith.constant 0 : index
    %c0_4 = arith.constant 0 : index
    %4 = vector.load %arg3[%c0_3, %c0_4] : memref<1x512xf32, #tpu.memory_space<vmem>>, vector<1x512xf32>
    %5 = vector.broadcast %4 : vector<1x512xf32> to vector<16x512xf32>
    %6 = arith.addf %3, %5 : vector<16x512xf32>
    %cst_5 = arith.constant 0.000000e+00 : f32
    %7 = vector.broadcast %cst_5 : f32 to vector<16x512xf32>
    %8 = arith.maximumf %6, %7 : vector<16x512xf32>
    %9 = arith.truncf %8 : vector<16x512xf32> to vector<16x512xbf16>
    %c0_6 = arith.constant 0 : index
    %c0_7 = arith.constant 0 : index
    %10 = vector.load %arg4[%c0_6, %c0_7] : memref<512x128xbf16, #tpu.memory_space<vmem>>, vector<512x128xbf16>
    %cst_8 = arith.constant dense<0.000000e+00> : vector<16x128xf32>
    %11 = tpu.matmul %9, %10, %cst_8 {dimension_numbers = #tpu.dot_dimension_numbers<[1], [0], [0], [1], [0, 0, 1, 1], [], []>} : vector<16x512xbf16>, vector<512x128xbf16>, vector<16x128xf32> -> vector<16x128xf32>
    %c0_9 = arith.constant 0 : index
    %c0_10 = arith.constant 0 : index
    %12 = vector.load %arg5[%c0_9, %c0_10] : memref<1x128xf32, #tpu.memory_space<vmem>>, vector<1x128xf32>
    %13 = vector.broadcast %12 : vector<1x128xf32> to vector<16x128xf32>
    %14 = arith.addf %11, %13 : vector<16x128xf32>
    %c0_11 = arith.constant 0 : index
    %c0_12 = arith.constant 0 : index
    %15 = vector.load %arg6[%c0_11, %c0_12] : memref<16x128xf32, #tpu.memory_space<vmem>>, vector<16x128xf32>
    tpu.vector_store %arg6[%c0_11, %c0_12], %14 {strides = array<i32>} : memref<16x128xf32, #tpu.memory_space<vmem>>, vector<16x128xf32>,
    return
  }
  func.func @transform_0(%arg0: i32) -> (i32, i32) {
    %c0_i32 = arith.constant 0 : i32
    %c0_i32_0 = arith.constant 0 : i32
    return %arg0, %c0_i32 : i32, i32
  }
  func.func @transform_1(%arg0: i32) -> (i32, i32) {
    %c0_i32 = arith.constant 0 : i32
    %c0_i32_0 = arith.constant 0 : i32
    %c0_i32_1 = arith.constant 0 : i32
    return %c0_i32, %c0_i32_0 : i32, i32
  }
  func.func @transform_2(%arg0: i32) -> (i32, i32) {
    %c0_i32 = arith.constant 0 : i32
    %c0_i32_0 = arith.constant 0 : i32
    %c0_i32_1 = arith.constant 0 : i32
    return %c0_i32, %c0_i32_0 : i32, i32
  }
  func.func @transform_3(%arg0: i32) -> (i32, i32) {
    %c0_i32 = arith.constant 0 : i32
    %c0_i32_0 = arith.constant 0 : i32
    %c0_i32_1 = arith.constant 0 : i32
    return %c0_i32, %c0_i32_0 : i32, i32
  }
  func.func @transform_4(%arg0: i32) -> (i32, i32) {
    %c0_i32 = arith.constant 0 : i32
    %c0_i32_0 = arith.constant 0 : i32
    %c0_i32_1 = arith.constant 0 : i32
    return %c0_i32, %c0_i32_0 : i32, i32
  }
  func.func @transform_5(%arg0: i32) -> (i32, i32) {
    %c0_i32 = arith.constant 0 : i32
    %c0_i32_0 = arith.constant 0 : i32
    return %arg0, %c0_i32 : i32, i32
  }
}

</mosaic_0001>

<bundles_post_ra>
// kernel: mlp_forward.1
= control target key start
LH: loop header
LB: loop body
LE: loop exit
PB: predicated region body
PF: predicated region fallthrough
CT: control target
= control target key end

     0   :  { %10 = vsyncpa [#allocation3], 0  ;;  %s2046_s0 = inlined_call_operand.hbm [shape: f32[8,512], index: 0, kind: input, shape index: {}]   ;;  %s2047_s1 = inlined_call_operand.hbm [shape: bf16[512,512], index: 1, kind: input, shape index: {}]   ;;  %s2048_s2 = inlined_call_operand.hbm [shape: f32[1,512], index: 2, kind: input, shape index: {}]   ;;  %s2049_s3 = inlined_call_operand.hbm [shape: bf16[512,128], index: 3, kind: input, shape index: {}]   ;;  %s2050_s4 = inlined_call_operand.vmem [shape: f32[1,128], index: 4, kind: input, shape index: {}]   ;;  %s2051_s5 = inlined_call_operand.hbm [shape: f32[8,128], index: 5, kind: output, shape index: {}]  }
   0x1   :  { %11 = vsyncpa [#allocation6], 0 }
   0x2   :  { %12 = vsyncpa [#allocation9], 0 }
   0x3   :  { %13 = vsyncpa [#allocation4], 0 }
   0x4   :  { %18 = vsyncadd [#allocation3], 512  ;;  %s1977_s18 = smov [#allocation5]  }
   0x5   :  { %s31_s19 = sshll.u32 %s1977_s18, 4  ;;  %s32_s19 = int_to_ptr.vmem [resolvable:$true] %s31_s19 }
   0x6   :  { %s1877_s20 = scalar_lea.vmem %s32_s19, 16384  ;;  %p1882_p1 = scmp.lt.s32.totalorder %s32_s19, %s32_s19 }
   0x7   :  { %p1878_p0 = scmp.ne.s32.totalorder %s32_s19, %s1877_s20  ;;  %p1883_p2 = scmp.lt.s32.totalorder %s1877_s20, %s1877_s20 }
   0x9   :  { %p1884_p3 = por %p1883_p2, %p1882_p1 }
   0xb   :  { %p1885_p4 = pnand %p1884_p3, %p1878_p0 }
   0xd   :  { %1888 = shalt.err (!%p1885_p4)
}
   0xe   :  { %s1978_s21 = smov 256   ;;  %s1979_s22 = smov 16  }
   0xf   :  { %37 = dma.hbm_to_vmem [thread:$0]  %s2047_s1, 16384, %s32_s19, [#allocation6], %s1978_s21, %s1978_s21, %s1979_s22  }
  0x10   :  { %s1980_s25 = smov [#allocation2]  }
  0x11   :  { %s19_s26 = sshll.u32 %s1980_s25, 4  ;;  %s20_s26 = int_to_ptr.vmem [resolvable:$true] %s19_s26 }
  0x12   :  { %s1897_s27 = scalar_lea.vmem %s20_s26, 512  ;;  %s1901_s28 = scalar_lea.vmem %s20_s26, 1024 }
  0x13   :  { %p1898_p5 = scmp.ne.s32.totalorder %s20_s26, %s1897_s27  ;;  %p1902_p6 = scmp.lt.s32.totalorder %s20_s26, %s20_s26 }
  0x14   :  { %p1903_p7 = scmp.lt.s32.totalorder %s1901_s28, %s1897_s27 }
  0x16   :  { %p1904_p8 = por %p1903_p7, %p1902_p6 }
  0x18   :  { %p1905_p9 = pnand %p1904_p8, %p1898_p5 }
  0x1a   :  { %1908 = shalt.err (!%p1905_p9)
}
  0x1b   :  { %s1981_s29 = smov 512   ;;  %s1982_s30 = smov 32  }
  0x1c   :  { %25 = dma.hbm_to_vmem [thread:$0]  %s2046_s0, 512, %s20_s26, [#allocation3], %s1981_s29, %s1981_s29, %s1982_s30  }
  0x1d   :  { %s1983_s8 = smov [#allocation7]   ;;  %s1984_s1 = smov [#allocation8]  }
  0x1e   :  { %s44_s9 = sshll.u32 %s1983_s8, 4  ;;  %s53_s10 = sshll.u32 %s1984_s1, 4  ;;  %s45_s9 = int_to_ptr.vmem [resolvable:$true] %s44_s9  ;;  %s54_s10 = int_to_ptr.vmem [resolvable:$true] %s53_s10 }
  0x1f   :  { %s1917_s11 = scalar_lea.vmem %s45_s9, 64  ;;  %p1922_p11 = scmp.lt.s32.totalorder %s45_s9, %s45_s9 }
  0x20   :  { %p1918_p10 = scmp.ne.s32.totalorder %s45_s9, %s1917_s11  ;;  %p1923_p12 = scmp.lt.s32.totalorder %s1917_s11, %s1917_s11 }
  0x22   :  { %p1924_p13 = por %p1923_p12, %p1922_p11 }
  0x24   :  { %p1925_p0 = pnand %p1924_p13, %p1918_p10 }
  0x26   :  { %1928 = shalt.err (!%p1925_p0)
}
  0x27   :  { %47 = dma.hbm_to_vmem [thread:$0]  %s2048_s2, 64, %s45_s9, [#allocation6]  }
  0x28   :  { %s1937_s14 = scalar_lea.vmem %s54_s10, 4096  ;;  %p1942_p2 = scmp.lt.s32.totalorder %s54_s10, %s54_s10 }
  0x29   :  { %p1938_p1 = scmp.ne.s32.totalorder %s54_s10, %s1937_s14  ;;  %p1943_p3 = scmp.lt.s32.totalorder %s1937_s14, %s1937_s14 }
  0x2b   :  { %p1944_p4 = por %p1943_p3, %p1942_p2 }
  0x2d   :  { %p1945_p5 = pnand %p1944_p4, %p1938_p1 }
  0x2f   :  { %1948 = shalt.err (!%p1945_p5)
}
  0x30   :  { %s1985_s0 = smov 64   ;;  %s1986_s15 = smov 4  }
  0x31   :  { %59 = dma.hbm_to_vmem [thread:$0]  %s2049_s3, 4096, %s54_s10, [#allocation9], %s1985_s0, %s1985_s0, %s1986_s15  }
  0x32   :  { %1969 = dma.done.wait [#allocation3], 1024  }
  0x33   :  { %1970 = vsyncadd [#allocation3], 4294966272 }
  0x34   :  { %1971 = dma.done.wait [#allocation6], 16448  }
  0x35   :  { %1972 = vsyncadd [#allocation6], 4294950848 }
  0x36   :  { %1973 = dma.done.wait [#allocation9], 4096  }
  0x37   :  { %1974 = vsyncadd [#allocation9], 4294963200  ;;  %v1645_v0 = vld [vmem:[#allocation5 + $0xe4] ss:$16 sps:$4 sm:$0xff]   ;;  %v1649_v2 = vld [vmem:[#allocation5 + $0xe0] ss:$16 sps:$4 sm:$0xff]  }
  0x38   :  { %v1647_v1 = vld [vmem:[#allocation5 + $0x2e4] ss:$16 sps:$4 sm:$0xff]   ;;  %877 = vmatprep.subr.bf16.mxu0 %v1645_v0  ;;  %v1650_v3 = vld [vmem:[#allocation5 + $0x2e0] ss:$16 sps:$4 sm:$0xff]   ;;  %v76_v46 = vld [vmem:[#allocation2 + $0x8] sm:$0xff] }
  0x39   :  { %920 = vmatprep.subr.bf16.mxu1 %v1647_v1  ;;  %v1651_v4 = vld [vmem:[#allocation5 + $0xc4] ss:$16 sps:$4 sm:$0xff]   ;;  %878 = vmatpush1.bf16.msra.mxu0 %v1649_v2  ;;  %v1655_v6 = vld [vmem:[#allocation5 + $0xc0] ss:$16 sps:$4 sm:$0xff]   ;;  %v80_v47 = vld [vmem:[#allocation2 + $0x28] sm:$0xff] }
  0x3a   :  { %921 = vmatpush1.bf16.msra.mxu1 %v1650_v3  ;;  %v1653_v5 = vld [vmem:[#allocation5 + $0x2c4] ss:$16 sps:$4 sm:$0xff]   ;;  %879 = vmatprep.subr.bf16.mxu0 %v1651_v4  ;;  %v1656_v7 = vld [vmem:[#allocation5 + $0x2c0] ss:$16 sps:$4 sm:$0xff]   ;;  %v78_v48 = vld [vmem:[#allocation2 + $0x18] sm:$0xff]  ;;  %v84_v53 = vpack.c.bf16 %v80_v47, %v76_v46 }
  0x3b   :  { %922 = vmatprep.subr.bf16.mxu1 %v1653_v5  ;;  %v1657_v8 = vld [vmem:[#allocation5 + $0xa4] ss:$16 sps:$4 sm:$0xff]   ;;  %v1661_v10 = vld [vmem:[#allocation5 + $0xa0] ss:$16 sps:$4 sm:$0xff]   ;;  %v82_v49 = vld [vmem:[#allocation2 + $0x38] sm:$0xff] }
  0x3c   :  { %v1659_v9 = vld [vmem:[#allocation5 + $0x2a4] ss:$16 sps:$4 sm:$0xff]   ;;  %v1662_v11 = vld [vmem:[#allocation5 + $0x2a0] ss:$16 sps:$4 sm:$0xff]   ;;  %v86_v54 = vpack.c.bf16 %v82_v49, %v78_v48  ;;  %909 = vmatprep.mubr.bf16.mxu0 %v84_v53  ;;  %v1789_v46 = vld [vmem:[#allocation5 + $0x1e8] ss:$16 sps:$4 sm:$0xff]  }
  0x3d   :  { %880 = vmatpush1.bf16.msra.mxu0 %v1655_v6  ;;  %v1663_v12 = vld [vmem:[#allocation5 + $0x84] ss:$16 sps:$4 sm:$0xff]   ;;  %v1667_v14 = vld [vmem:[#allocation5 + $0x80] ss:$16 sps:$4 sm:$0xff]   ;;  %v1792_v47 = vld [vmem:[#allocation5 + $0x3e8] ss:$16 sps:$4 sm:$0xff]  }
  0x3e   :  { %923 = vmatpush1.bf16.msra.mxu1 %v1656_v7  ;;  %881 = vmatprep.subr.bf16.mxu0 %v1657_v8  ;;  %v1665_v13 = vld [vmem:[#allocation5 + $0x284] ss:$16 sps:$4 sm:$0xff]   ;;  %v1668_v15 = vld [vmem:[#allocation5 + $0x280] ss:$16 sps:$4 sm:$0xff]   ;;  %v1797_v48 = vld [vmem:[#allocation5 + $0x1cc] ss:$16 sps:$4 sm:$0xff]  }
  0x3f   :  { %924 = vmatprep.subr.bf16.mxu1 %v1659_v9  ;;  %v1669_v16 = vld [vmem:[#allocation5 + $0x64] ss:$16 sps:$4 sm:$0xff]   ;;  %v1673_v18 = vld [vmem:[#allocation5 + $0x60] ss:$16 sps:$4 sm:$0xff]   ;;  %952 = vmatprep.mubr.bf16.mxu1 %v86_v54  ;;  %v1800_v49 = vld [vmem:[#allocation5 + $0x3cc] ss:$16 sps:$4 sm:$0xff]  }
  0x40   :  { %v1671_v17 = vld [vmem:[#allocation5 + $0x264] ss:$16 sps:$4 sm:$0xff]   ;;  %v1674_v19 = vld [vmem:[#allocation5 + $0x260] ss:$16 sps:$4 sm:$0xff]  }
  0x41   :  { %882 = vmatpush1.bf16.msra.mxu0 %v1661_v10  ;;  %v1675_v20 = vld [vmem:[#allocation5 + $0x44] ss:$16 sps:$4 sm:$0xff]   ;;  %v1679_v22 = vld [vmem:[#allocation5 + $0x40] ss:$16 sps:$4 sm:$0xff]   ;;  %v1743_v10 = vld [vmem:[#allocation5 + $0xec] ss:$16 sps:$4 sm:$0xff]  }
  0x42   :  { %925 = vmatpush1.bf16.msra.mxu1 %v1662_v11  ;;  %883 = vmatprep.subr.bf16.mxu0 %v1663_v12  ;;  %v1677_v21 = vld [vmem:[#allocation5 + $0x244] ss:$16 sps:$4 sm:$0xff]   ;;  %v1680_v23 = vld [vmem:[#allocation5 + $0x240] ss:$16 sps:$4 sm:$0xff]   ;;  %v1746_v11 = vld [vmem:[#allocation5 + $0x2ec] ss:$16 sps:$4 sm:$0xff]  }
  0x43   :  { %926 = vmatprep.subr.bf16.mxu1 %v1665_v13  ;;  %v1681_v24 = vld [vmem:[#allocation5 + $0x24] ss:$16 sps:$4 sm:$0xff]   ;;  %v1685_v26 = vld [vmem:[#allocation5 + $0x20] ss:$16 sps:$4 sm:$0xff]  }
  0x44   :  { %v1683_v25 = vld [vmem:[#allocation5 + $0x224] ss:$16 sps:$4 sm:$0xff]   ;;  %v1686_v27 = vld [vmem:[#allocation5 + $0x220] ss:$16 sps:$4 sm:$0xff]  }
  0x45   :  { %884 = vmatpush1.bf16.msra.mxu0 %v1667_v14  ;;  %v1687_v28 = vld [vmem:[#allocation5 + $0x4] ss:$16 sps:$4 sm:$0xff]   ;;  %v1691_v30 = vld [vmem:[#allocation5] ss:$16 sps:$4 sm:$0xff]   ;;  %v1741_v14 = vld [vmem:[#allocation5 + $0xe8] ss:$16 sps:$4 sm:$0xff]  }
  0x46   :  { %927 = vmatpush1.bf16.msra.mxu1 %v1668_v15  ;;  %885 = vmatprep.subr.bf16.mxu0 %v1669_v16  ;;  %v1689_v29 = vld [vmem:[#allocation5 + $0x204] ss:$16 sps:$4 sm:$0xff]   ;;  %v1692_v31 = vld [vmem:[#allocation5 + $0x200] ss:$16 sps:$4 sm:$0xff]   ;;  %v1744_v15 = vld [vmem:[#allocation5 + $0x2e8] ss:$16 sps:$4 sm:$0xff]  }
  0x47   :  { %928 = vmatprep.subr.bf16.mxu1 %v1671_v17  ;;  %v1693_v32 = vld [vmem:[#allocation5 + $0x1e4] ss:$16 sps:$4 sm:$0xff]   ;;  %v1697_v34 = vld [vmem:[#allocation5 + $0x1e0] ss:$16 sps:$4 sm:$0xff]   ;;  %v1749_v16 = vld [vmem:[#allocation5 + $0xcc] ss:$16 sps:$4 sm:$0xff]  }
  0x48   :  { %v1695_v33 = vld [vmem:[#allocation5 + $0x3e4] ss:$16 sps:$4 sm:$0xff]   ;;  %v1698_v35 = vld [vmem:[#allocation5 + $0x3e0] ss:$16 sps:$4 sm:$0xff]   ;;  %v1752_v17 = vld [vmem:[#allocation5 + $0x2cc] ss:$16 sps:$4 sm:$0xff]  }
  0x49   :  { %886 = vmatpush1.bf16.msra.mxu0 %v1673_v18  ;;  %v1699_v36 = vld [vmem:[#allocation5 + $0x1c4] ss:$16 sps:$4 sm:$0xff]   ;;  %v1703_v38 = vld [vmem:[#allocation5 + $0x1c0] ss:$16 sps:$4 sm:$0xff]   ;;  %v1747_v18 = vld [vmem:[#allocation5 + $0xc8] ss:$16 sps:$4 sm:$0xff]  }
  0x4a   :  { %929 = vmatpush1.bf16.msra.mxu1 %v1674_v19  ;;  %887 = vmatprep.subr.bf16.mxu0 %v1675_v20  ;;  %v1701_v37 = vld [vmem:[#allocation5 + $0x3c4] ss:$16 sps:$4 sm:$0xff]   ;;  %v1704_v39 = vld [vmem:[#allocation5 + $0x3c0] ss:$16 sps:$4 sm:$0xff]   ;;  %v1750_v19 = vld [vmem:[#allocation5 + $0x2c8] ss:$16 sps:$4 sm:$0xff]  }
  0x4b   :  { %930 = vmatprep.subr.bf16.mxu1 %v1677_v21  ;;  %v1705_v40 = vld [vmem:[#allocation5 + $0x1a4] ss:$16 sps:$4 sm:$0xff]   ;;  %v1709_v42 = vld [vmem:[#allocation5 + $0x1a0] ss:$16 sps:$4 sm:$0xff]   ;;  %v1755_v20 = vld [vmem:[#allocation5 + $0xac] ss:$16 sps:$4 sm:$0xff]  }
  0x4c   :  { %v1707_v41 = vld [vmem:[#allocation5 + $0x3a4] ss:$16 sps:$4 sm:$0xff]   ;;  %v1710_v43 = vld [vmem:[#allocation5 + $0x3a0] ss:$16 sps:$4 sm:$0xff]   ;;  %v1758_v21 = vld [vmem:[#allocation5 + $0x2ac] ss:$16 sps:$4 sm:$0xff]  }
  0x4d   :  { %888 = vmatpush1.bf16.msra.mxu0 %v1679_v22  ;;  %v1711_v44 = vld [vmem:[#allocation5 + $0x184] ss:$16 sps:$4 sm:$0xff]   ;;  %v1715_v50 = vld [vmem:[#allocation5 + $0x180] ss:$16 sps:$4 sm:$0xff]   ;;  %v1753_v22 = vld [vmem:[#allocation5 + $0xa8] ss:$16 sps:$4 sm:$0xff]  }
  0x4e   :  { %931 = vmatpush1.bf16.msra.mxu1 %v1680_v23  ;;  %889 = vmatprep.subr.bf16.mxu0 %v1681_v24  ;;  %v1713_v45 = vld [vmem:[#allocation5 + $0x384] ss:$16 sps:$4 sm:$0xff]   ;;  %v1716_v51 = vld [vmem:[#allocation5 + $0x380] ss:$16 sps:$4 sm:$0xff]   ;;  %v1756_v23 = vld [vmem:[#allocation5 + $0x2a8] ss:$16 sps:$4 sm:$0xff]  }
  0x4f   :  { %932 = vmatprep.subr.bf16.mxu1 %v1683_v25  ;;  %v1717_v52 = vld [vmem:[#allocation5 + $0x164] ss:$16 sps:$4 sm:$0xff]   ;;  %v1721_v56 = vld [vmem:[#allocation5 + $0x160] ss:$16 sps:$4 sm:$0xff]   ;;  %v1761_v24 = vld [vmem:[#allocation5 + $0x8c] ss:$16 sps:$4 sm:$0xff]  }
  0x50   :  { %v1719_v55 = vld [vmem:[#allocation5 + $0x364] ss:$16 sps:$4 sm:$0xff]   ;;  %v1722_v57 = vld [vmem:[#allocation5 + $0x360] ss:$16 sps:$4 sm:$0xff]   ;;  %v1764_v25 = vld [vmem:[#allocation5 + $0x28c] ss:$16 sps:$4 sm:$0xff]  }
  0x51   :  { %890 = vmatpush1.bf16.msra.mxu0 %v1685_v26  ;;  %v1723_v58 = vld [vmem:[#allocation5 + $0x144] ss:$16 sps:$4 sm:$0xff]   ;;  %v1727_v60 = vld [vmem:[#allocation5 + $0x140] ss:$16 sps:$4 sm:$0xff]   ;;  %v1759_v26 = vld [vmem:[#allocation5 + $0x88] ss:$16 sps:$4 sm:$0xff]  }
  0x52   :  { %933 = vmatpush1.bf16.msra.mxu1 %v1686_v27  ;;  %891 = vmatprep.subr.bf16.mxu0 %v1687_v28  ;;  %v1725_v59 = vld [vmem:[#allocation5 + $0x344] ss:$16 sps:$4 sm:$0xff]   ;;  %v1728_v61 = vld [vmem:[#allocation5 + $0x340] ss:$16 sps:$4 sm:$0xff]   ;;  %v1762_v27 = vld [vmem:[#allocation5 + $0x288] ss:$16 sps:$4 sm:$0xff]  }
  0x53   :  { %934 = vmatprep.subr.bf16.mxu1 %v1689_v29  ;;  %v1729_v62 = vld [vmem:[#allocation5 + $0x124] ss:$16 sps:$4 sm:$0xff]   ;;  %v1733_v0 = vld [vmem:[#allocation5 + $0x120] ss:$16 sps:$4 sm:$0xff]   ;;  %v1767_v28 = vld [vmem:[#allocation5 + $0x6c] ss:$16 sps:$4 sm:$0xff]  }
  0x54   :  { %v1731_v63 = vld [vmem:[#allocation5 + $0x324] ss:$16 sps:$4 sm:$0xff]   ;;  %v1734_v1 = vld [vmem:[#allocation5 + $0x320] ss:$16 sps:$4 sm:$0xff]   ;;  %v1770_v29 = vld [vmem:[#allocation5 + $0x26c] ss:$16 sps:$4 sm:$0xff]  }
  0x55   :  { %892 = vmatpush1.bf16.msra.mxu0 %v1691_v30  ;;  %v1735_v2 = vld [vmem:[#allocation5 + $0x104] ss:$16 sps:$4 sm:$0xff]   ;;  %v1739_v4 = vld [vmem:[#allocation5 + $0x100] ss:$16 sps:$4 sm:$0xff]   ;;  %v1765_v30 = vld [vmem:[#allocation5 + $0x68] ss:$16 sps:$4 sm:$0xff]  }
  0x56   :  { %935 = vmatpush1.bf16.msra.mxu1 %v1692_v31  ;;  %893 = vmatprep.subr.bf16.mxu0 %v1693_v32  ;;  %v1737_v3 = vld [vmem:[#allocation5 + $0x304] ss:$16 sps:$4 sm:$0xff]   ;;  %v1740_v5 = vld [vmem:[#allocation5 + $0x300] ss:$16 sps:$4 sm:$0xff]   ;;  %v1768_v31 = vld [vmem:[#allocation5 + $0x268] ss:$16 sps:$4 sm:$0xff]  }
  0x57   :  { %936 = vmatprep.subr.bf16.mxu1 %v1695_v33  ;;  %v75_v6 = vld [vmem:[#allocation2] sm:$0xff]  ;;  %v77_v8 = vld [vmem:[#allocation2 + $0x10] sm:$0xff]  ;;  %v1773_v32 = vld [vmem:[#allocation5 + $0x4c] ss:$16 sps:$4 sm:$0xff]  }
  0x58   :  { %v79_v7 = vld [vmem:[#allocation2 + $0x20] sm:$0xff]  ;;  %v81_v9 = vld [vmem:[#allocation2 + $0x30] sm:$0xff]  ;;  %v1776_v33 = vld [vmem:[#allocation5 + $0x24c] ss:$16 sps:$4 sm:$0xff]  }
  0x59   :  { %894 = vmatpush2.bf16.msra.mxu0 %v1697_v34  ;;  %v2032_v12 = vpack.c.bf16 %v79_v7, %v75_v6  ;;  %v2034_v13 = vpack.c.bf16 %v81_v9, %v77_v8  ;;  %v1771_v34 = vld [vmem:[#allocation5 + $0x48] ss:$16 sps:$4 sm:$0xff]   ;;  %v1833_v8 = vld [vmem:[#allocation5 + $0x10c] ss:$16 sps:$4 sm:$0xff]  }
  0x5a   :  { %937 = vmatpush2.bf16.msra.mxu1 %v1698_v35  ;;  %895 = vmatprep.subr.bf16.mxu0 %v1699_v36  ;;  %v1774_v35 = vld [vmem:[#allocation5 + $0x248] ss:$16 sps:$4 sm:$0xff]   ;;  %v1779_v36 = vld [vmem:[#allocation5 + $0x2c] ss:$16 sps:$4 sm:$0xff]  }
  0x5b   :  { %938 = vmatprep.subr.bf16.mxu1 %v1701_v37  ;;  %v1782_v37 = vld [vmem:[#allocation5 + $0x22c] ss:$16 sps:$4 sm:$0xff]   ;;  %v1825_v6 = vld [vmem:[#allocation5 + $0x128] ss:$16 sps:$4 sm:$0xff]  }
  0x5c   :  { %v1828_v7 = vld [vmem:[#allocation5 + $0x328] ss:$16 sps:$4 sm:$0xff]   ;;  %v1836_v9 = vld [vmem:[#allocation5 + $0x30c] ss:$16 sps:$4 sm:$0xff]  }
  0x5d   :  { %896 = vmatpush2.bf16.msra.mxu0 %v1703_v38  ;;  %v1777_v38 = vld [vmem:[#allocation5 + $0x28] ss:$16 sps:$4 sm:$0xff]  }
  0x5e   :  { %939 = vmatpush2.bf16.msra.mxu1 %v1704_v39  ;;  %897 = vmatprep.subr.bf16.mxu0 %v1705_v40  ;;  %v1780_v39 = vld [vmem:[#allocation5 + $0x228] ss:$16 sps:$4 sm:$0xff]   ;;  %v1785_v40 = vld [vmem:[#allocation5 + $0xc] ss:$16 sps:$4 sm:$0xff]  }
  0x5f   :  { %940 = vmatprep.subr.bf16.mxu1 %v1707_v41  ;;  %v1788_v41 = vld [vmem:[#allocation5 + $0x20c] ss:$16 sps:$4 sm:$0xff]  }
  0x61   :  { %898 = vmatpush2.bf16.msra.mxu0 %v1709_v42  ;;  %v1783_v42 = vld [vmem:[#allocation5 + $0x8] ss:$16 sps:$4 sm:$0xff]  }
  0x62   :  { %941 = vmatpush2.bf16.msra.mxu1 %v1710_v43  ;;  %899 = vmatprep.subr.bf16.mxu0 %v1711_v44  ;;  %v1786_v43 = vld [vmem:[#allocation5 + $0x208] ss:$16 sps:$4 sm:$0xff]   ;;  %v1791_v44 = vld [vmem:[#allocation5 + $0x1ec] ss:$16 sps:$4 sm:$0xff]  }
  0x63   :  { %942 = vmatprep.subr.bf16.mxu1 %v1713_v45  ;;  %v1794_v45 = vld [vmem:[#allocation5 + $0x3ec] ss:$16 sps:$4 sm:$0xff]  }
  0x65   :  { %900 = vmatpush2.bf16.msra.mxu0 %v1715_v50  ;;  %v1795_v50 = vld [vmem:[#allocation5 + $0x1c8] ss:$16 sps:$4 sm:$0xff]  }
  0x66   :  { %943 = vmatpush2.bf16.msra.mxu1 %v1716_v51  ;;  %901 = vmatprep.subr.bf16.mxu0 %v1717_v52  ;;  %v1798_v51 = vld [vmem:[#allocation5 + $0x3c8] ss:$16 sps:$4 sm:$0xff]   ;;  %v1803_v52 = vld [vmem:[#allocation5 + $0x1ac] ss:$16 sps:$4 sm:$0xff]  }
  0x67   :  { %944 = vmatprep.subr.bf16.mxu1 %v1719_v55  ;;  %v1804_v55 = vld [vmem:[#allocation5 + $0x3a8] ss:$16 sps:$4 sm:$0xff]  }
  0x69   :  { %902 = vmatpush2.bf16.msra.mxu0 %v1721_v56  ;;  %v1809_v56 = vld [vmem:[#allocation5 + $0x18c] ss:$16 sps:$4 sm:$0xff]  }
  0x6a   :  { %945 = vmatpush2.bf16.msra.mxu1 %v1722_v57  ;;  %903 = vmatprep.subr.bf16.mxu0 %v1723_v58  ;;  %v1812_v57 = vld [vmem:[#allocation5 + $0x38c] ss:$16 sps:$4 sm:$0xff]   ;;  %v1807_v58 = vld [vmem:[#allocation5 + $0x188] ss:$16 sps:$4 sm:$0xff]  }
  0x6b   :  { %946 = vmatprep.subr.bf16.mxu1 %v1725_v59  ;;  %v1810_v59 = vld [vmem:[#allocation5 + $0x388] ss:$16 sps:$4 sm:$0xff]  }
  0x6d   :  { %904 = vmatpush2.bf16.msra.mxu0 %v1727_v60  ;;  %v1815_v60 = vld [vmem:[#allocation5 + $0x16c] ss:$16 sps:$4 sm:$0xff]  }
  0x6e   :  { %947 = vmatpush2.bf16.msra.mxu1 %v1728_v61  ;;  %905 = vmatprep.subr.bf16.mxu0 %v1729_v62  ;;  %v1818_v61 = vld [vmem:[#allocation5 + $0x36c] ss:$16 sps:$4 sm:$0xff]   ;;  %v1813_v62 = vld [vmem:[#allocation5 + $0x168] ss:$16 sps:$4 sm:$0xff]  }
  0x6f   :  { %948 = vmatprep.subr.bf16.mxu1 %v1731_v63  ;;  %v1816_v63 = vld [vmem:[#allocation5 + $0x368] ss:$16 sps:$4 sm:$0xff]  }
  0x71   :  { %906 = vmatpush2.bf16.msra.mxu0 %v1733_v0  ;;  %v1821_v0 = vld [vmem:[#allocation5 + $0x14c] ss:$16 sps:$4 sm:$0xff]  }
  0x72   :  { %949 = vmatpush2.bf16.msra.mxu1 %v1734_v1  ;;  %907 = vmatprep.subr.bf16.mxu0 %v1735_v2  ;;  %v1824_v1 = vld [vmem:[#allocation5 + $0x34c] ss:$16 sps:$4 sm:$0xff]   ;;  %v1819_v2 = vld [vmem:[#allocation5 + $0x148] ss:$16 sps:$4 sm:$0xff]  }
  0x73   :  { %950 = vmatprep.subr.bf16.mxu1 %v1737_v3  ;;  %v1822_v3 = vld [vmem:[#allocation5 + $0x348] ss:$16 sps:$4 sm:$0xff]  }
  0x75   :  { %908 = vmatpush2.bf16.msra.mxu0 %v1739_v4  ;;  %v1827_v4 = vld [vmem:[#allocation5 + $0x12c] ss:$16 sps:$4 sm:$0xff]  }
  0x76   :  { %951 = vmatpush2.bf16.msra.mxu1 %v1740_v5  ;;  %963 = vmatprep.subr.bf16.mxu0 %v1743_v10  ;;  %v1830_v5 = vld [vmem:[#allocation5 + $0x32c] ss:$16 sps:$4 sm:$0xff]   ;;  %v1831_v10 = vld [vmem:[#allocation5 + $0x108] ss:$16 sps:$4 sm:$0xff]  }
  0x77   :  { %1006 = vmatprep.subr.bf16.mxu1 %v1746_v11  ;;  %v1834_v11 = vld [vmem:[#allocation5 + $0x308] ss:$16 sps:$4 sm:$0xff]  }
  0x78   :  { %910 = vmatmul.mubr.bf16.vlgmr.msra.gmra.mxu0 %v2032_v12 }
  0x79   :  { %953 = vmatmul.mubr.bf16.vlgmr.msra.gmra.mxu1 %v2034_v13  ;;  %964 = vmatpush1.bf16.msra.mxu0 %v1741_v14  ;;  %v1837_v14 = vld [vmem:[#allocation8 + $0x78] sm:$0xff]  }
  0x7a   :  { %1007 = vmatpush1.bf16.msra.mxu1 %v1744_v15  ;;  %965 = vmatprep.subr.bf16.mxu0 %v1749_v16  ;;  %v1838_v15 = vld [vmem:[#allocation8 + $0x38] sm:$0xff]   ;;  %v1839_v16 = vld [vmem:[#allocation8 + $0x70] sm:$0xff]  }
  0x7b   :  { %1008 = vmatprep.subr.bf16.mxu1 %v1752_v17  ;;  %995 = vmatprep.mubr.bf16.mxu0 %v84_v53  ;;  %v1806_v53 = vld [vmem:[#allocation5 + $0x3ac] ss:$16 sps:$4 sm:$0xff]   ;;  %v1840_v17 = vld [vmem:[#allocation8 + $0x30] sm:$0xff]  }
  0x7c   :  { %1038 = vmatprep.mubr.bf16.mxu1 %v86_v54  ;;  %v1801_v54 = vld [vmem:[#allocation5 + $0x1a8] ss:$16 sps:$4 sm:$0xff]  }
  0x7d   :  { %966 = vmatpush1.bf16.msra.mxu0 %v1747_v18  ;;  %v1841_v18 = vld [vmem:[#allocation8 + $0x68] sm:$0xff]  }
  0x7e   :  { %1009 = vmatpush1.bf16.msra.mxu1 %v1750_v19  ;;  %967 = vmatprep.subr.bf16.mxu0 %v1755_v20  ;;  %v1842_v19 = vld [vmem:[#allocation8 + $0x28] sm:$0xff]   ;;  %v1843_v20 = vld [vmem:[#allocation8 + $0x60] sm:$0xff]  }
  0x7f   :  { %1010 = vmatprep.subr.bf16.mxu1 %v1758_v21  ;;  %v1844_v21 = vld [vmem:[#allocation8 + $0x20] sm:$0xff]  }
  0x81   :  { %968 = vmatpush1.bf16.msra.mxu0 %v1753_v22  ;;  %v1845_v22 = vld [vmem:[#allocation8 + $0x58] sm:$0xff]  }
  0x82   :  { %1011 = vmatpush1.bf16.msra.mxu1 %v1756_v23  ;;  %969 = vmatprep.subr.bf16.mxu0 %v1761_v24  ;;  %v1846_v23 = vld [vmem:[#allocation8 + $0x18] sm:$0xff]   ;;  %v1847_v24 = vld [vmem:[#allocation8 + $0x50] sm:$0xff]  }
  0x83   :  { %1012 = vmatprep.subr.bf16.mxu1 %v1764_v25  ;;  %v1853_v25 = vld [vmem:[#allocation8 + $0xf8] sm:$0xff]  }
  0x85   :  { %970 = vmatpush1.bf16.msra.mxu0 %v1759_v26  ;;  %v1855_v26 = vld [vmem:[#allocation8 + $0xf0] sm:$0xff]  }
  0x86   :  { %1013 = vmatpush1.bf16.msra.mxu1 %v1762_v27  ;;  %971 = vmatprep.subr.bf16.mxu0 %v1767_v28  ;;  %v1849_v27 = vld [vmem:[#allocation8 + $0x48] sm:$0xff]   ;;  %v1856_v28 = vld [vmem:[#allocation8 + $0xb0] sm:$0xff]  }
  0x87   :  { %1014 = vmatprep.subr.bf16.mxu1 %v1770_v29  ;;  %v1857_v29 = vld [vmem:[#allocation8 + $0xe8] sm:$0xff]  }
  0x89   :  { %972 = vmatpush1.bf16.msra.mxu0 %v1765_v30  ;;  %v1850_v30 = vld [vmem:[#allocation8 + $0x8] sm:$0xff]  }
  0x8a   :  { %1015 = vmatpush1.bf16.msra.mxu1 %v1768_v31  ;;  %973 = vmatprep.subr.bf16.mxu0 %v1773_v32  ;;  %v1851_v31 = vld [vmem:[#allocation8 + $0x40] sm:$0xff]   ;;  %v1858_v32 = vld [vmem:[#allocation8 + $0xa8] sm:$0xff]  }
  0x8b   :  { %1016 = vmatprep.subr.bf16.mxu1 %v1776_v33  ;;  %v1859_v33 = vld [vmem:[#allocation8 + $0xe0] sm:$0xff]  }
  0x8d   :  { %974 = vmatpush1.bf16.msra.mxu0 %v1771_v34  ;;  %v1852_v34 = vld [vmem:[#allocation8] sm:$0xff]  }
  0x8e   :  { %1017 = vmatpush1.bf16.msra.mxu1 %v1774_v35  ;;  %975 = vmatprep.subr.bf16.mxu0 %v1779_v36  ;;  %v1860_v35 = vld [vmem:[#allocation8 + $0xa0] sm:$0xff]   ;;  %v1861_v36 = vld [vmem:[#allocation8 + $0xd8] sm:$0xff]  }
  0x8f   :  { %1018 = vmatprep.subr.bf16.mxu1 %v1782_v37  ;;  %v1862_v37 = vld [vmem:[#allocation8 + $0x98] sm:$0xff]  }
  0x91   :  { %976 = vmatpush1.bf16.msra.mxu0 %v1777_v38  ;;  %v1863_v38 = vld [vmem:[#allocation8 + $0xd0] sm:$0xff]  }
  0x92   :  { %1019 = vmatpush1.bf16.msra.mxu1 %v1780_v39  ;;  %977 = vmatprep.subr.bf16.mxu0 %v1785_v40  ;;  %v1864_v39 = vld [vmem:[#allocation8 + $0x90] sm:$0xff]   ;;  %v1865_v40 = vld [vmem:[#allocation8 + $0xc8] sm:$0xff]  }
  0x93   :  { %1020 = vmatprep.subr.bf16.mxu1 %v1788_v41  ;;  %v1866_v41 = vld [vmem:[#allocation8 + $0x88] sm:$0xff]  }
  0x95   :  { %978 = vmatpush1.bf16.msra.mxu0 %v1783_v42  ;;  %v1867_v42 = vld [vmem:[#allocation8 + $0xc0] sm:$0xff]  }
  0x96   :  { %1021 = vmatpush1.bf16.msra.mxu1 %v1786_v43  ;;  %979 = vmatprep.subr.bf16.mxu0 %v1791_v44  ;;  %v1868_v43 = vld [vmem:[#allocation8 + $0x80] sm:$0xff]   ;;  %v217_v44 = vlaneseq }
  0x97   :  { %1022 = vmatprep.subr.bf16.mxu1 %v1794_v45 }
  0x98   :  { %v218_v45 = vshrl.u32 %v217_v44, 7 }
  0x99   :  { %980 = vmatpush2.bf16.msra.mxu0 %v1789_v46 }
  0x9a   :  { %1023 = vmatpush2.bf16.msra.mxu1 %v1792_v47  ;;  %981 = vmatprep.subr.bf16.mxu0 %v1797_v48  ;;  %v223_v46 = vsub.s32 1, %v218_v45  ;;  %v215_v47 = vld [vmem:[#allocation7] sm:$0xf]  ;;  %v219_v48 = vsub.s32 0, %v218_v45 }
  0x9b   :  { %1024 = vmatprep.subr.bf16.mxu1 %v1800_v49 }
  0x9c   :  { %v224_v49 = vrot.slane %v215_v47, %v223_v46 }
  0x9d   :  { %982 = vmatpush2.bf16.msra.mxu0 %v1795_v50  ;;  %v220_v50 = vrot.slane %v215_v47, %v219_v48 }
  0x9e   :  { %1025 = vmatpush2.bf16.msra.mxu1 %v1798_v51  ;;  %983 = vmatprep.subr.bf16.mxu0 %v1803_v52 }
  0x9f   :  { %1026 = vmatprep.subr.bf16.mxu1 %v1806_v53 }
  0xa1   :  { %984 = vmatpush2.bf16.msra.mxu0 %v1801_v54 }
  0xa2   :  { %1027 = vmatpush2.bf16.msra.mxu1 %v1804_v55  ;;  %985 = vmatprep.subr.bf16.mxu0 %v1809_v56 }
  0xa3   :  { %1028 = vmatprep.subr.bf16.mxu1 %v1812_v57 }
  0xa5   :  { %986 = vmatpush2.bf16.msra.mxu0 %v1807_v58 }
  0xa6   :  { %1029 = vmatpush2.bf16.msra.mxu1 %v1810_v59  ;;  %987 = vmatprep.subr.bf16.mxu0 %v1815_v60 }
  0xa7   :  { %1030 = vmatprep.subr.bf16.mxu1 %v1818_v61 }
  0xa9   :  { %988 = vmatpush2.bf16.msra.mxu0 %v1813_v62 }
  0xaa   :  { %1031 = vmatpush2.bf16.msra.mxu1 %v1816_v63  ;;  %989 = vmatprep.subr.bf16.mxu0 %v1821_v0 }
  0xab   :  { %1032 = vmatprep.subr.bf16.mxu1 %v1824_v1 }
  0xad   :  { %990 = vmatpush2.bf16.msra.mxu0 %v1819_v2 }
  0xae   :  { %1033 = vmatpush2.bf16.msra.mxu1 %v1822_v3  ;;  %991 = vmatprep.subr.bf16.mxu0 %v1827_v4 }
  0xaf   :  { %1034 = vmatprep.subr.bf16.mxu1 %v1830_v5 }
  0xb1   :  { %992 = vmatpush2.bf16.msra.mxu0 %v1825_v6 }
  0xb2   :  { %1035 = vmatpush2.bf16.msra.mxu1 %v1828_v7  ;;  %993 = vmatprep.subr.bf16.mxu0 %v1833_v8 }
  0xb3   :  { %1036 = vmatprep.subr.bf16.mxu1 %v1836_v9  ;;  %v231_v9 = vsub.s32 3, %v218_v45 }
  0xb5   :  { %994 = vmatpush2.bf16.msra.mxu0 %v1831_v10  ;;  %v227_v10 = vsub.s32 2, %v218_v45 }
  0xb6   :  { %1037 = vmatpush2.bf16.msra.mxu1 %v1834_v11  ;;  %1588 = vmatprep.subr.bf16.mxu0 %v1837_v14  ;;  %v232_v11 = vrot.slane %v215_v47, %v231_v9 }
  0xb7   :  { %1610 = vmatprep.subr.bf16.mxu1 %v1853_v25  ;;  %v228_v14 = vrot.slane %v215_v47, %v227_v10 }
  0xb8   :  { %996 = vmatmul.mubr.bf16.vlgmr.msra.gmra.mxu0 %v2032_v12  ;;  %v1854_v12 = vld [vmem:[#allocation8 + $0xb8] sm:$0xff]  }
  0xb9   :  { %1039 = vmatmul.mubr.bf16.vlgmr.msra.gmra.mxu1 %v2034_v13  ;;  %1589 = vmatpush3.bf16.msra.mxu0 %v1838_v15  ;;  %v1848_v13 = vld [vmem:[#allocation8 + $0x10] sm:$0xff]  }
  0xba   :  { %1590 = vmatprep.subr.bf16.mxu0 %v1839_v16  ;;  %1611 = vmatpush3.bf16.msra.mxu1 %v1854_v12 }
  0xbb   :  { %1612 = vmatprep.subr.bf16.mxu1 %v1855_v26 }
  0xbd   :  { %1591 = vmatpush3.bf16.msra.mxu0 %v1840_v17 }
  0xbe   :  { %1592 = vmatprep.subr.bf16.mxu0 %v1841_v18  ;;  %1613 = vmatpush3.bf16.msra.mxu1 %v1856_v28 }
  0xbf   :  { %1614 = vmatprep.subr.bf16.mxu1 %v1857_v29 }
  0xc1   :  { %1593 = vmatpush3.bf16.msra.mxu0 %v1842_v19 }
  0xc2   :  { %1594 = vmatprep.subr.bf16.mxu0 %v1843_v20  ;;  %1615 = vmatpush3.bf16.msra.mxu1 %v1858_v32 }
  0xc3   :  { %1616 = vmatprep.subr.bf16.mxu1 %v1859_v33 }
  0xc5   :  { %1595 = vmatpush3.bf16.msra.mxu0 %v1844_v21 }
  0xc6   :  { %1596 = vmatprep.subr.bf16.mxu0 %v1845_v22  ;;  %1617 = vmatpush3.bf16.msra.mxu1 %v1860_v35 }
  0xc7   :  { %1618 = vmatprep.subr.bf16.mxu1 %v1861_v36 }
  0xc9   :  { %1597 = vmatpush3.bf16.msra.mxu0 %v1846_v23 }
  0xca   :  { %1598 = vmatprep.subr.bf16.mxu0 %v1847_v24  ;;  %1619 = vmatpush3.bf16.msra.mxu1 %v1862_v37 }
  0xcb   :  { %1620 = vmatprep.subr.bf16.mxu1 %v1863_v38 }
  0xcd   :  { %1599 = vmatpush3.bf16.msra.mxu0 %v1848_v13 }
  0xce   :  { %1600 = vmatprep.subr.bf16.mxu0 %v1849_v27  ;;  %1621 = vmatpush3.bf16.msra.mxu1 %v1864_v39  ;;  %v1555_v39 = vld [vmem:[%s2050_s4] ss:$0 sm:$0xff] }
  0xcf   :  { %1622 = vmatprep.subr.bf16.mxu1 %v1865_v40 }
  0xd1   :  { %1601 = vmatpush3.bf16.msra.mxu0 %v1850_v30 }
  0xd2   :  { %1602 = vmatprep.subr.bf16.mxu0 %v1851_v31  ;;  %1623 = vmatpush3.bf16.msra.mxu1 %v1866_v41 }
  0xd3   :  { %1624 = vmatprep.subr.bf16.mxu1 %v1867_v42 }
  0xd5   :  { %1603 = vmatpush3.bf16.msra.mxu0 %v1852_v34 }
  0xd6   :  { %1625 = vmatpush3.bf16.msra.mxu1 %v1868_v43 }
 0x138   :  { %v911_v51 = vpop.f32.mrf.mxu0 }
 0x139   :  { %v954_v52 = vpop.f32.mrf.mxu1  ;;  %v912_v56 = vadd.f32 %v911_v51, %v220_v50 }
 0x13a   :  { %v913_v53 = vpop.f32.mrf.mxu0 }
 0x13b   :  { %v956_v54 = vpop.f32.mrf.mxu1  ;;  %v914_v55 = vadd.f32 %v913_v53, %v224_v49  ;;  %v955_v0 = vadd.f32 %v954_v52, %v912_v56 }
 0x13c   :  { %v915_v57 = vpop.f32.mrf.mxu0 }
 0x13d   :  { %v958_v58 = vpop.f32.mrf.mxu1  ;;  %v916_v59 = vadd.f32 %v915_v57, %v220_v50  ;;  %v957_v61 = vadd.f32 %v956_v54, %v914_v55  ;;  %v1049_v6 = vmax.f32 %v955_v0, 0.0 }
 0x13e   :  { %v917_v60 = vpop.f32.mrf.mxu0 }
 0x13f   :  { %v959_v62 = vadd.f32 %v958_v58, %v916_v59  ;;  %v918_v63 = vadd.f32 %v917_v60, %v224_v49  ;;  %v960_v1 = vpop.f32.mrf.mxu1  ;;  %v1050_v4 = vmax.f32 %v957_v61, 0.0 }
 0x141   :  { %v961_v2 = vadd.f32 %v960_v1, %v918_v63  ;;  %v1053_v3 = vmax.f32 %v959_v62, 0.0 }
 0x143   :  { %v1054_v5 = vmax.f32 %v961_v2, 0.0  ;;  %v1057_v8 = vpack.c.bf16 %v1053_v3, %v1049_v6 }
 0x145   :  { %v1058_v7 = vpack.c.bf16 %v1054_v5, %v1050_v4 }
 0x147   :  { %1356 = vmatprep.mubr.bf16.mxu0 %v1058_v7 }
 0x148   :  { %1357 = vmatmul.mubr.bf16.vlgmr.msra.gmra.mxu0 %v1057_v8 }
 0x178   :  { %v997_v15 = vpop.f32.mrf.mxu0 }
 0x179   :  { %v1040_v16 = vpop.f32.mrf.mxu1  ;;  %v998_v20 = vadd.f32 %v997_v15, %v228_v14 }
 0x17a   :  { %v999_v17 = vpop.f32.mrf.mxu0 }
 0x17b   :  { %v1042_v18 = vpop.f32.mrf.mxu1  ;;  %v1000_v19 = vadd.f32 %v999_v17, %v232_v11  ;;  %v1041_v13 = vadd.f32 %v1040_v16, %v998_v20 }
 0x17c   :  { %v1001_v21 = vpop.f32.mrf.mxu0 }
 0x17d   :  { %v1044_v22 = vpop.f32.mrf.mxu1  ;;  %v1002_v23 = vadd.f32 %v1001_v21, %v228_v14  ;;  %v1043_v25 = vadd.f32 %v1042_v18, %v1000_v19  ;;  %v1051_v32 = vmax.f32 %v1041_v13, 0.0 }
 0x17e   :  { %v1003_v24 = vpop.f32.mrf.mxu0 }
 0x17f   :  { %v1045_v12 = vadd.f32 %v1044_v22, %v1002_v23  ;;  %v1004_v26 = vadd.f32 %v1003_v24, %v232_v11  ;;  %v1046_v27 = vpop.f32.mrf.mxu1  ;;  %v1052_v30 = vmax.f32 %v1043_v25, 0.0 }
 0x181   :  { %v1047_v28 = vadd.f32 %v1046_v27, %v1004_v26  ;;  %v1055_v29 = vmax.f32 %v1045_v12, 0.0 }
 0x183   :  { %v1056_v31 = vmax.f32 %v1047_v28, 0.0  ;;  %v1059_v34 = vpack.c.bf16 %v1055_v29, %v1051_v32 }
 0x185   :  { %v1060_v33 = vpack.c.bf16 %v1056_v31, %v1052_v30 }
 0x187   :  { %1397 = vmatprep.mubr.bf16.mxu1 %v1060_v33 }
 0x188   :  { %1398 = vmatmul.mubr.bf16.vlgmr.msra.gmra.mxu1 %v1059_v34 }
 0x208   :  { %v1604_v35 = vpop.f32.mrf.mxu0 }
 0x20a   :  { %v1605_v36 = vpop.f32.mrf.mxu0 }
 0x20b   :  { %v1606_v38 = vadd.f32 %v1605_v36, %v1604_v35 }
 0x20c   :  { %v1607_v37 = vpop.f32.mrf.mxu0 }
 0x20d   :  { %v1359_v43 = vadd.f32 %v1606_v38, %v1555_v39 }
 0x20e   :  { %v1608_v40 = vpop.f32.mrf.mxu0 }
 0x20f   :  { %v1609_v44 = vadd.f32 %v1608_v40, %v1607_v37 }
 0x211   :  { %v1362_v49 = vadd.f32 %v1609_v44, %v1555_v39 }
 0x248   :  { %v1626_v41 = vpop.f32.mrf.mxu1 }
 0x24a   :  { %v1627_v42 = vpop.f32.mrf.mxu1 }
 0x24b   :  { %v1628_v45 = vadd.f32 %v1627_v42, %v1626_v41 }
 0x24c   :  { %v1629_v46 = vpop.f32.mrf.mxu1 }
 0x24d   :  { %v1400_v47 = vadd.f32 %v1628_v45, %v1359_v43 }
 0x24e   :  { %v1630_v48 = vpop.f32.mrf.mxu1 }
 0x24f   :  { %1406 = vst [vmem:[#allocation10] sm:$0xff] %v1400_v47  ;;  %v1631_v50 = vadd.f32 %v1630_v48, %v1629_v46 }
 0x251   :  { %v1403_v51 = vadd.f32 %v1631_v50, %v1362_v49 }
 0x253   :  { %1407 = vst [vmem:[#allocation10 + $0x8] sm:$0xff] %v1403_v51 }
 0x254   :  { %1412 = vsyncadd [#allocation4], 128  ;;  %s1987_s18 = smov [#allocation10]  }
 0x255   :  { %s1413_s19 = sshll.u32 %s1987_s18, 4  ;;  %s1414_s19 = int_to_ptr.vmem [resolvable:$true] %s1413_s19 }
 0x256   :  { %s1949_s20 = scalar_lea.vmem %s1414_s19, 128  ;;  %s1953_s4 = scalar_lea.vmem %s1414_s19, 256 }
 0x257   :  { %p1950_p6 = scmp.ne.s32.totalorder %s1414_s19, %s1949_s20  ;;  %p1954_p7 = scmp.lt.s32.totalorder %s1414_s19, %s1414_s19 }
 0x258   :  { %p1955_p8 = scmp.lt.s32.totalorder %s1953_s4, %s1949_s20 }
 0x25a   :  { %p1956_p9 = por %p1955_p8, %p1954_p7 }
 0x25c   :  { %p1957_p10 = pnand %p1956_p9, %p1950_p6 }
 0x25e   :  { %1960 = shalt.err (!%p1957_p10)
}
 0x25f   :  { %s1988_s21 = smov 128   ;;  %s1989_s22 = smov 8  }
 0x260   :  { %1419 = dma.vmem_to_hbm [thread:$0]  %s1414_s19, 128, %s2051_s5, [#allocation4], %s1988_s21, %s1988_s21, %s1989_s22  }
 0x261   :  { %1975 = dma.done.wait [#allocation4], 256  }
 0x262   :  { %1976 = vsyncadd [#allocation4], 4294967040 }
 0x263   :  { %1423 = vsyncpa [#allocation3], 1 }
 0x264   :  { %1424 = vsyncpa [#allocation6], 1 }
 0x265   :  { %1425 = vsyncpa [#allocation9], 1 }
 0x266   :  { %1426 = vsyncpa [#allocation4], 1 }

</bundles_post_ra>
